<compile_context>
chip_gen: v7x
topology: tpu7x:2x2x1
jax: 0.10.0
libtpu: 0.0.40
codegen_flags: <defaults>
</compile_context>

<pallas_src>
import numpy as np
import jax
import jax.numpy as jnp
from jax.experimental import pallas as pl
from jax.experimental.pallas import tpu as pltpu


# ---------------------------------------------------------------------------
# Pallas kernel: a block of Bblk batch elements per grid step.
# ---------------------------------------------------------------------------
def _memory_bank_att_kernel(x_ref, wks_ref, wzy_ref, bp_ref, o_ref):
    Bblk, N, C = x_ref.shape
    H = wks_ref.shape[0]
    P = N // H                      # rows n' in [h*P, (h+1)*P) all read head h

    x = x_ref[...]                                                   # (Bblk, N, C)

    # Scores s[b,h,m] = scale * <memory_bank[h], to_k(x)[b,m, head-h block]>
    #                 = sum_c wks[h,c] * x[b,m,c]
    # (to_k, the memory bank and the softmax scale are folded into wks host-side).
    wks_b = jnp.broadcast_to(wks_ref[...], (Bblk, H, C))             # hoisted broadcast
    s = jnp.einsum('bhc,bnc->bhn', wks_b, x,
                   preferred_element_type=jnp.float32)               # (Bblk, H, N)

    # Softmax over the sequence (lane) axis — matches attn.softmax(dim=-1).
    s = s - jnp.max(s, axis=-1, keepdims=True)
    p = jnp.exp(s)
    # approx=True would push the divide onto the EUP but costs ~1e-4 relative
    # error; keep the exact reciprocal to hold the test tolerance.
    a = p * pl.reciprocal(jnp.sum(p, axis=-1, keepdims=True), approx=False)

    # z[b,h,c] = sum_m a[b,h,m] * x[b,m,c]
    z = jnp.einsum('bhn,bnc->bhc', a, x,
                   preferred_element_type=jnp.float32)               # (Bblk, H, C)

    # Value projection + torch .view(B,N,C) + grouped proj, all folded into one
    # per-head (C, C) weight.  The attention output is n-independent, so each
    # head h owns one distinct output row, replicated over its P sequence rows.
    bp = bp_ref[...]                                                 # (1, C)
    for h in range(H):                                               # static, H is tiny
        y_h = jnp.dot(z[:, h, :], wzy_ref[h],
                      preferred_element_type=jnp.float32) + bp       # (Bblk, C)
        o_ref[:, h * P:(h + 1) * P, :] = jnp.broadcast_to(
            y_h[:, None, :], (Bblk, P, C)).astype(o_ref.dtype)


# ---------------------------------------------------------------------------
# Wrapper
# ---------------------------------------------------------------------------
def memory_bank_att_pallas(x, wks, wzy, bp, *, block_b=8):
    """x: (B, N, C) float32 -> (B, N, C). Weights come from build_kernel_params."""
    B, N, C = x.shape
    H = wks.shape[0]
    assert N % H == 0, "kernel folding assumes N % num_heads == 0"

    # Batch block: target >= 8 (amortize per-step overhead, sublane-dense stores),
    # clamped to a divisor of B and to a conservative VMEM budget that also fits
    # v7x (64 MiB physical, 32 MiB default scoped): x + out blocks, double-buffered.
    vmem_budget = 24 * 1024 * 1024
    per_batch_bytes = 2 * 2 * N * C * 4
    bblk = max(1, min(B, block_b, vmem_budget // per_batch_bytes))
    while B % bblk != 0:
        bblk -= 1

    return pl.pallas_call(
        _memory_bank_att_kernel,
        out_shape=jax.ShapeDtypeStruct((B, N, C), x.dtype),
        grid_spec=pltpu.PrefetchScalarGridSpec(
            num_scalar_prefetch=0,
            grid=(B // bblk,),
            in_specs=[
                pl.BlockSpec((bblk, N, C), lambda i: (i, 0, 0)),   # x, bblk batches
                pl.BlockSpec((H, C), lambda i: (0, 0)),            # folded k/mb/scale
                pl.BlockSpec((H, C, C), lambda i: (0, 0, 0)),      # per-head value+proj
                pl.BlockSpec((1, C), lambda i: (0, 0)),            # proj bias
            ],
            out_specs=pl.BlockSpec((bblk, N, C), lambda i: (i, 0, 0)),
        ),
        compiler_params=pltpu.CompilerParams(
            dimension_semantics=("parallel",)),
    )(x, wks, wzy, bp)


# ---------------------------------------------------------------------------
# Host-side weight folding (exact linear algebra, done once on the parameters)
# ---------------------------------------------------------------------------
def _local_linear_eff(ws, bs, in_features, out_features, groups):
    """Dense math-layout (in, out) equivalent of Local_Linear.

    Local_Linear splits the input into `groups` chunks; group g's o-th output
    feature lands at column o*groups + g (interleaved, because of the
    cat(..., dim=-1) followed by flatten(2))."""
    in_g = in_features // groups
    out_g = out_features // groups
    W = np.zeros((in_features, out_features), dtype=np.float64)
    b = np.zeros((out_features,), dtype=np.float64)
    for g in range(groups):
        cols = np.arange(out_g) * groups + g
        W[g * in_g:(g + 1) * in_g, cols] = np.asarray(ws[g], dtype=np.float64).T
        if bs is not None:
            b[cols] = np.asarray(bs[g], dtype=np.float64)
    return W, (b if bs is not None else None)


def build_kernel_params(k_ws, v_ws, p_ws, p_bs, memory_bank, *, N, num_heads):
    """Fold the module's parameters into the dense weights the kernel consumes."""
    mb = np.asarray(memory_bank, dtype=np.float64)          # (H, Dh)
    H = num_heads
    Dh = mb.shape[1]
    C = H * Dh
    scale = float(Dh) ** -0.5

    # TODO(synk): N % num_heads != 0 makes some .view(B,N,C) rows mix two heads;
    # that needs per-row-pattern folded weights (at most 2H-1 of them).
    assert N % H == 0, "kernel folding assumes N % num_heads == 0"

    Wk, _ = _local_linear_eff(k_ws, None, C, C, H)          # to_k (qkv_bias=False)
    Wv, _ = _local_linear_eff(v_ws, None, C, C, H)          # to_v
    Wp, bp = _local_linear_eff(p_ws, p_bs, C, C, H)         # proj (bias=True)

    # s[h, m] = scale * sum_d mb[h, d] * (x @ Wk)[m, h*Dh + d]
    #         = sum_c x[m, c] * wks[h, c]
    wks = scale * np.einsum('chd,hd->hc', Wk.reshape(C, H, Dh), mb)      # (H, C)

    # Attention output is n-independent and N % H == 0, so view(B,N,C) row n'
    # equals tile(out[b, n'//(N/H)], H).  Fold view + grouped proj into one
    # (C, C) weight per head:  y_row(h) = z[h] @ Wv[:, h-block] @ Wp_sum + bp.
    Wp_sum = Wp.reshape(H, Dh, C).sum(axis=0)               # (Dh, C): sum over input chunks
    wzy = np.stack([Wv[:, h * Dh:(h + 1) * Dh] @ Wp_sum for h in range(H)],
                   axis=0)                                  # (H, C, C)

    return (jnp.asarray(wks, dtype=jnp.float32),
            jnp.asarray(wzy, dtype=jnp.float32),
            jnp.asarray(bp[None, :], dtype=jnp.float32))


# ---------------------------------------------------------------------------
# Plain-JAX reference: literal mirror of the PyTorch forward (no folding)
# ---------------------------------------------------------------------------
def _local_linear_ref(x, ws, bs):
    groups = len(ws)
    in_g = x.shape[-1] // groups
    outs = []
    for g in range(groups):
        xg = x[..., g * in_g:(g + 1) * in_g]
        o = xg @ ws[g].T
        if bs is not None:
            o = o + bs[g]
        outs.append(o[..., None])
    out = jnp.concatenate(outs, axis=-1)          # (B, N, out_g, G)
    return out.reshape(*x.shape[:2], -1)          # flatten(2) -> index o*G + g


def memory_bank_att_reference(x, k_ws, v_ws, p_ws, p_bs, memory_bank, *, num_heads):
    B, N, C = x.shape
    H = num_heads
    Dh = C // H
    scale = Dh ** -0.5
    k = _local_linear_ref(x, k_ws, None).reshape(B, N, H, Dh).transpose(0, 2, 1, 3)
    v = _local_linear_ref(x, v_ws, None).reshape(B, N, H, Dh).transpose(0, 2, 1, 3)
    kT = jnp.swapaxes(k, -2, -1)                                      # (B,H,Dh,N)
    mb_rep = jnp.broadcast_to(memory_bank[:, None, :], (H, N, Dh))    # (H,N,Dh)
    attn = jnp.einsum('hnd,bhdm->bhnm', mb_rep, kT) * scale
    attn = jax.nn.softmax(attn, axis=-1)
    out = jnp.einsum('bhnm,bhmd->bhnd', attn, v)                      # (B,H,N,Dh)
    xv = out.reshape(B, N, C)          # == torch .contiguous().view(B, N, -1)
    return _local_linear_ref(xv, p_ws, p_bs)


# ---------------------------------------------------------------------------
# Self-test
# ---------------------------------------------------------------------------
def _run_case(key, B, N, C, H):
    Dh = C // H
    in_g = C // H
    keys = jax.random.split(key, 6)
    x = jax.random.normal(keys[0], (B, N, C), dtype=jnp.float32)

    # Per-group Local_Linear weights in PyTorch (out_features, in_features) layout.
    bound = 1.0 / (in_g ** 0.5)
    k_ws = jax.random.uniform(keys[1], (H, in_g, in_g), minval=-bound, maxval=bound)
    v_ws = jax.random.uniform(keys[2], (H, in_g, in_g), minval=-bound, maxval=bound)
    p_ws = jax.random.uniform(keys[3], (H, in_g, in_g), minval=-bound, maxval=bound)
    p_bs = jax.random.uniform(keys[4], (H, in_g), minval=-bound, maxval=bound)
    memory_bank = 0.02 * jax.random.normal(keys[5], (H, Dh), dtype=jnp.float32)

    params = build_kernel_params(k_ws, v_ws, p_ws, p_bs, memory_bank,
                                 N=N, num_heads=H)

    fn = jax.jit(memory_bank_att_pallas)
    out = jax.block_until_ready(fn(x, *params))

    ref = memory_bank_att_reference(x, k_ws, v_ws, p_ws, p_bs, memory_bank,
                                    num_heads=H)
    np.testing.assert_allclose(np.asarray(out), np.asarray(ref),
                               rtol=1e-4, atol=1e-5)


if __name__ == "__main__":
    key = jax.random.PRNGKey(0)
    k1, k2 = jax.random.split(key)
    # Module-default small config (dim=32, num_heads=2).
    _run_case(k1, B=2, N=8, C=32, H=2)
    # Larger batch: exercises the Bblk=8 batching path and a multi-step grid.
    _run_case(k2, B=16, N=16, C=32, H=2)
    print("KERNEL_OK")
</pallas_src>

<mosaic_0001>
module attributes {stable_mosaic.version = 11 : i64} {
  func.func @_memory_bank_att_kernel(%arg0: i32, %arg1: memref<2x8x32xf32, #tpu.memory_space<vmem>>, %arg2: memref<2x32xf32, #tpu.memory_space<vmem>>, %arg3: memref<2x32x32xf32, #tpu.memory_space<vmem>>, %arg4: memref<1x32xf32, #tpu.memory_space<vmem>>, %arg5: memref<2x8x32xf32, #tpu.memory_space<vmem>>) attributes {dimension_semantics = [#tpu.dimension_semantics<parallel>], iteration_bounds = array<i64: 1>, scalar_prefetch = 0 : i64, scratch_operands = 0 : i64, tpu.core_type = #tpu.core_type<tc>, window_params = [{transform_indices = @transform_0, window_bounds = array<i64: 2, 8, 32>}, {pipeline_mode = #tpu.pipeline_mode<synchronous>, transform_indices = @transform_1, window_bounds = array<i64: 2, 32>}, {pipeline_mode = #tpu.pipeline_mode<synchronous>, transform_indices = @transform_2, window_bounds = array<i64: 2, 32, 32>}, {pipeline_mode = #tpu.pipeline_mode<synchronous>, transform_indices = @transform_3, window_bounds = array<i64: 1, 32>}, {transform_indices = @transform_4, window_bounds = array<i64: 2, 8, 32>}]} {
    %c0 = arith.constant 0 : index
    %c0_0 = arith.constant 0 : index
    %c0_1 = arith.constant 0 : index
    %0 = vector.load %arg1[%c0, %c0_0, %c0_1] : memref<2x8x32xf32, #tpu.memory_space<vmem>>, vector<2x8x32xf32>
    %c0_2 = arith.constant 0 : index
    %c0_3 = arith.constant 0 : index
    %1 = vector.load %arg2[%c0_2, %c0_3] : memref<2x32xf32, #tpu.memory_space<vmem>>, vector<2x32xf32>
    %2 = vector.shape_cast %1 : vector<2x32xf32> to vector<1x2x32xf32>
    %3 = vector.broadcast %2 : vector<1x2x32xf32> to vector<2x2x32xf32>
    "tpu.trace_start"() <{level = 10 : i32, message = "bhc,bnc->bhn"}> : () -> ()
    %cst = arith.constant dense<0.000000e+00> : vector<2x2x8xf32>
    %4 = tpu.matmul %3, %0, %cst {dimension_numbers = #tpu.dot_dimension_numbers<[2], [2], [1], [1], [0, 0, 0, 1, 1, 1], [0], [0]>} : vector<2x2x32xf32>, vector<2x8x32xf32>, vector<2x2x8xf32> -> vector<2x2x8xf32>
    "tpu.trace_stop"() : () -> ()
    %cst_4 = arith.constant dense<0xFF800000> : vector<2x2xf32>
    %5 = vector.multi_reduction <maximumf>, %4, %cst_4 [2] : vector<2x2x8xf32> to vector<2x2xf32>
    %6 = vector.shape_cast %5 : vector<2x2xf32> to vector<2x2x1xf32>
    %7 = vector.broadcast %6 : vector<2x2x1xf32> to vector<2x2x8xf32>
    %8 = arith.subf %4, %7 : vector<2x2x8xf32>
    %9 = math.exp %8 : vector<2x2x8xf32>
    %cst_5 = arith.constant dense<0.000000e+00> : vector<2x2xf32>
    %10 = vector.multi_reduction <add>, %9, %cst_5 [2] : vector<2x2x8xf32> to vector<2x2xf32>
    %11 = vector.shape_cast %10 : vector<2x2xf32> to vector<2x2x1xf32>
    %12 = tpu.reciprocal %11 : vector<2x2x1xf32> -> vector<2x2x1xf32>
    %13 = vector.broadcast %12 : vector<2x2x1xf32> to vector<2x2x8xf32>
    %14 = arith.mulf %9, %13 : vector<2x2x8xf32>
    "tpu.trace_start"() <{level = 10 : i32, message = "bhn,bnc->bhc"}> : () -> ()
    %cst_6 = arith.constant dense<0.000000e+00> : vector<2x2x32xf32>
    %15 = tpu.matmul %14, %0, %cst_6 {dimension_numbers = #tpu.dot_dimension_numbers<[2], [1], [1], [2], [0, 0, 0, 1, 1, 2], [0], [0]>} : vector<2x2x8xf32>, vector<2x8x32xf32>, vector<2x2x32xf32> -> vector<2x2x32xf32>
    "tpu.trace_stop"() : () -> ()
    %c0_7 = arith.constant 0 : index
    %c0_8 = arith.constant 0 : index
    %16 = vector.load %arg4[%c0_7, %c0_8] : memref<1x32xf32, #tpu.memory_space<vmem>>, vector<1x32xf32>
    %17 = vector.extract_strided_slice %15 {offsets = [0, 0, 0], sizes = [2, 1, 32], strides = [1, 1, 1]} : vector<2x2x32xf32> to vector<2x1x32xf32>
    %18 = vector.shape_cast %17 : vector<2x1x32xf32> to vector<2x32xf32>
    %c0_9 = arith.constant 0 : index
    %c0_10 = arith.constant 0 : index
    %c0_11 = arith.constant 0 : index
    %19 = vector.load %arg3[%c0_9, %c0_10, %c0_11] : memref<2x32x32xf32, #tpu.memory_space<vmem>>, vector<1x32x32xf32>
    %20 = vector.shape_cast %19 : vector<1x32x32xf32> to vector<32x32xf32>
    %cst_12 = arith.constant dense<0.000000e+00> : vector<2x32xf32>
    %21 = tpu.matmul %18, %20, %cst_12 {dimension_numbers = #tpu.dot_dimension_numbers<[1], [0], [0], [1], [0, 0, 1, 1], [], []>} : vector<2x32xf32>, vector<32x32xf32>, vector<2x32xf32> -> vector<2x32xf32>
    %22 = vector.broadcast %16 : vector<1x32xf32> to vector<2x32xf32>
    %23 = arith.addf %21, %22 : vector<2x32xf32>
    %24 = vector.shape_cast %23 : vector<2x32xf32> to vector<2x1x32xf32>
    %25 = vector.shape_cast %24 : vector<2x1x32xf32> to vector<2x1x32xf32>
    %26 = vector.broadcast %25 : vector<2x1x32xf32> to vector<2x4x32xf32>
    %c0_13 = arith.constant 0 : index
    %c0_14 = arith.constant 0 : index
    %c0_15 = arith.constant 0 : index
    %27 = vector.load %arg5[%c0_13, %c0_14, %c0_15] : memref<2x8x32xf32, #tpu.memory_space<vmem>>, vector<2x4x32xf32>
    tpu.vector_store %arg5[%c0_13, %c0_14, %c0_15], %26 {strides = array<i32>} : memref<2x8x32xf32, #tpu.memory_space<vmem>>, vector<2x4x32xf32>,
    %28 = vector.extract_strided_slice %15 {offsets = [0, 1, 0], sizes = [2, 1, 32], strides = [1, 1, 1]} : vector<2x2x32xf32> to vector<2x1x32xf32>
    %29 = vector.shape_cast %28 : vector<2x1x32xf32> to vector<2x32xf32>
    %c1 = arith.constant 1 : index
    %c0_16 = arith.constant 0 : index
    %c0_17 = arith.constant 0 : index
    %30 = vector.load %arg3[%c1, %c0_16, %c0_17] : memref<2x32x32xf32, #tpu.memory_space<vmem>>, vector<1x32x32xf32>
    %31 = vector.shape_cast %30 : vector<1x32x32xf32> to vector<32x32xf32>
    %cst_18 = arith.constant dense<0.000000e+00> : vector<2x32xf32>
    %32 = tpu.matmul %29, %31, %cst_18 {dimension_numbers = #tpu.dot_dimension_numbers<[1], [0], [0], [1], [0, 0, 1, 1], [], []>} : vector<2x32xf32>, vector<32x32xf32>, vector<2x32xf32> -> vector<2x32xf32>
    %33 = vector.broadcast %16 : vector<1x32xf32> to vector<2x32xf32>
    %34 = arith.addf %32, %33 : vector<2x32xf32>
    %35 = vector.shape_cast %34 : vector<2x32xf32> to vector<2x1x32xf32>
    %36 = vector.shape_cast %35 : vector<2x1x32xf32> to vector<2x1x32xf32>
    %37 = vector.broadcast %36 : vector<2x1x32xf32> to vector<2x4x32xf32>
    %c0_19 = arith.constant 0 : index
    %c4 = arith.constant 4 : index
    %c0_20 = arith.constant 0 : index
    %38 = vector.load %arg5[%c0_19, %c4, %c0_20] : memref<2x8x32xf32, #tpu.memory_space<vmem>>, vector<2x4x32xf32>
    tpu.vector_store %arg5[%c0_19, %c4, %c0_20], %37 {strides = array<i32>} : memref<2x8x32xf32, #tpu.memory_space<vmem>>, vector<2x4x32xf32>,
    return
  }
  func.func @transform_0(%arg0: i32) -> (i32, i32, i32) {
    %c0_i32 = arith.constant 0 : i32
    %c0_i32_0 = arith.constant 0 : i32
    %c0_i32_1 = arith.constant 0 : i32
    return %arg0, %c0_i32, %c0_i32_0 : i32, i32, i32
  }
  func.func @transform_1(%arg0: i32) -> (i32, i32) {
    %c0_i32 = arith.constant 0 : i32
    %c0_i32_0 = arith.constant 0 : i32
    %c0_i32_1 = arith.constant 0 : i32
    return %c0_i32, %c0_i32_0 : i32, i32
  }
  func.func @transform_2(%arg0: i32) -> (i32, i32, i32) {
    %c0_i32 = arith.constant 0 : i32
    %c0_i32_0 = arith.constant 0 : i32
    %c0_i32_1 = arith.constant 0 : i32
    %c0_i32_2 = arith.constant 0 : i32
    return %c0_i32, %c0_i32_0, %c0_i32_1 : i32, i32, i32
  }
  func.func @transform_3(%arg0: i32) -> (i32, i32) {
    %c0_i32 = arith.constant 0 : i32
    %c0_i32_0 = arith.constant 0 : i32
    %c0_i32_1 = arith.constant 0 : i32
    return %c0_i32, %c0_i32_0 : i32, i32
  }
  func.func @transform_4(%arg0: i32) -> (i32, i32, i32) {
    %c0_i32 = arith.constant 0 : i32
    %c0_i32_0 = arith.constant 0 : i32
    %c0_i32_1 = arith.constant 0 : i32
    return %arg0, %c0_i32, %c0_i32_0 : i32, i32, i32
  }
}

</mosaic_0001>

<bundles_post_ra>
// kernel: memory_bank_att_pallas.1
= control target key start
LH: loop header
LB: loop body
LE: loop exit
PB: predicated region body
PF: predicated region fallthrough
CT: control target
= control target key end

     0   :  { %9 = vsyncpa [#allocation3], 0  ;;  %s896_s0 = inlined_call_operand.hbm [shape: f32[2,8,32], index: 0, kind: input, shape index: {}]   ;;  %s897_s1 = inlined_call_operand.vmem [shape: f32[2,32], index: 1, kind: input, shape index: {}]   ;;  %s898_s2 = inlined_call_operand.hbm [shape: f32[2,32,32], index: 2, kind: input, shape index: {}]   ;;  %s899_s3 = inlined_call_operand.vmem [shape: f32[1,32], index: 3, kind: input, shape index: {}]   ;;  %s900_s4 = inlined_call_operand.hbm [shape: f32[2,8,32], index: 4, kind: output, shape index: {}]  }
   0x1   :  { %10 = vsyncpa [#allocation6], 0 }
   0x2   :  { %11 = vsyncpa [#allocation4], 0  ;;  %s795_s15 = smov [#allocation2]   ;;  %s723_s19 = scalar_lea.hbm %s896_s0, 256 }
   0x3   :  { %s17_s16 = sshll.u32 %s795_s15, 4  ;;  %p724_p0 = scmp.ne.s32.totalorder %s896_s0, %s723_s19  ;;  %s18_s16 = int_to_ptr.vmem [resolvable:$true] %s17_s16 }
   0x4   :  { %p727_p1 = scmp.lt.u32.totalorder %s723_s19, %s896_s0 }
   0x6   :  { %p729_p2 = pnand %p727_p1, %p724_p0 }
   0x8   :  { %732 = shalt.err (!%p729_p2)
}
   0x9   :  { %s733_s24 = scalar_lea.vmem %s18_s16, 256  ;;  %p738_p4 = scmp.lt.s32.totalorder %s18_s16, %s18_s16 }
   0xa   :  { %p734_p3 = scmp.ne.s32.totalorder %s18_s16, %s733_s24  ;;  %p739_p5 = scmp.lt.s32.totalorder %s733_s24, %s733_s24 }
   0xc   :  { %p740_p6 = por %p739_p5, %p738_p4 }
   0xe   :  { %p741_p7 = pnand %p740_p6, %p734_p3 }
  0x10   :  { %744 = shalt.err (!%p741_p7)
}
  0x11   :  { %s796_s25 = smov 128   ;;  %s797_s26 = smov 8  }
  0x12   :  { %23 = dma.hbm_to_vmem [thread:$0]  %s896_s0, 256, %s18_s16, [#allocation3], %s796_s25, %s796_s25, %s797_s26  }
  0x13   :  { %s798_s29 = smov [#allocation5]   ;;  %s745_s7 = scalar_lea.hbm %s898_s2, 1024 }
  0x14   :  { %s31_s30 = sshll.u32 %s798_s29, 4  ;;  %p746_p8 = scmp.ne.s32.totalorder %s898_s2, %s745_s7  ;;  %s32_s30 = int_to_ptr.vmem [resolvable:$true] %s31_s30 }
  0x15   :  { %p749_p9 = scmp.lt.u32.totalorder %s745_s7, %s898_s2 }
  0x17   :  { %p751_p10 = pnand %p749_p9, %p746_p8 }
  0x19   :  { %754 = shalt.err (!%p751_p10)
}
  0x1a   :  { %s755_s12 = scalar_lea.vmem %s32_s30, 1024  ;;  %p760_p12 = scmp.lt.s32.totalorder %s32_s30, %s32_s30 }
  0x1b   :  { %p756_p11 = scmp.ne.s32.totalorder %s32_s30, %s755_s12  ;;  %p761_p13 = scmp.lt.s32.totalorder %s755_s12, %s755_s12 }
  0x1d   :  { %p762_p0 = por %p761_p13, %p760_p12 }
  0x1f   :  { %p763_p1 = pnand %p762_p0, %p756_p11 }
  0x21   :  { %766 = shalt.err (!%p763_p1)
}
  0x22   :  { %37 = dma.hbm_to_vmem [thread:$0]  %s898_s2, 1024, %s32_s30, [#allocation6], %s796_s25, %s796_s25, %s797_s26  }
  0x23   :  { %789 = dma.done.wait [#allocation3], 256  }
  0x24   :  { %790 = vsyncadd [#allocation3], 4294967040 }
  0x25   :  { %791 = dma.done.wait [#allocation6], 1024  }
  0x26   :  { %792 = vsyncadd [#allocation6], 4294966272  ;;  %v799_v0 = vmov 0.0   ;;  %vm800_vm0 = vmmov 0   ;;  %vm49_vm1 = vcmask 261120   ;;  %v46_v1 = vld [vmem:[#allocation2] sm:$0xff]  ;;  %v461_v49 = vlaneseq }
  0x27   :  { %652 = vmatprep.subr.mxu0 %v799_v0  ;;  %654 = vmatprep.mubr.msk.f32.mxu0 %vm800_vm0, %v799_v0  ;;  %v47_v2 = vld [vmem:[#allocation2 + $0x8] sm:$0xff]  ;;  %v48_v3 = vld [vmem:[%s897_s1] sm:$0x3]  ;;  %vm199_vm2 = vcmask 58368   ;;  %v801_v20 = vmov 0.0|0.0   ;;  %vm222_vm3 = vcmask 64512  }
  0x28   :  { %657 = vmatprep.subr.mxu1 %v799_v0  ;;  %659 = vmatprep.mubr.msk.f32.mxu1 %vm800_vm0, %v799_v0  ;;  %v494_v25 = vld [vmem:[#allocation5 + $0x20] sm:$0xff]  ;;  %v495_v26 = vld [vmem:[#allocation5 + $0x28] sm:$0xff]  ;;  %v496_v33 = vld [vmem:[#allocation5 + $0x30] sm:$0xff]  ;;  %vm383_vm4 = vcmask 1041409   ;;  %v802_v47 = vmov 1966171168  }
  0x29   :  { %653 = vmatpush3.xpose.msk.msra.mxu0 %vm49_vm1, %v46_v1  ;;  %658 = vmatpush3.xpose.msk.msra.mxu1 %vm49_vm1, %v47_v2  ;;  %v701_v28 = vpack.c.bf16 %v495_v26, %v494_v25  ;;  %v370_v30 = vld [vmem:[#allocation5] sm:$0xff]  ;;  %v371_v31 = vld [vmem:[#allocation5 + $0x8] sm:$0xff]  ;;  %v497_v34 = vld [vmem:[#allocation5 + $0x38] sm:$0xff]  ;;  %v459_v48 = vunpack.c.l.s4 %v802_v47  ;;  %v462_v51 = vshrl.u32 %v461_v49, 7  ;;  %vm490_vm5 = vcmask 257024   ;;  %s803_s16 = smov [#allocation7]  }
  0x2a   :  { %662 = vmatprep.subr.mxu0 %v799_v0  ;;  %667 = vmatprep.subr.mxu1 %v799_v0  ;;  %v695_v32 = vpack.c.bf16 %v371_v31, %v370_v30  ;;  %v704_v35 = vpack.c.bf16 %v497_v34, %v496_v33  ;;  %v372_v36 = vld [vmem:[#allocation5 + $0x10] sm:$0xff]  ;;  %v373_v37 = vld [vmem:[#allocation5 + $0x18] sm:$0xff]  ;;  %s612_s17 = sshll.u32 %s803_s16, 4  ;;  %s613_s17 = int_to_ptr.vmem [resolvable:$true] %s612_s17 }
  0x2b   :  { %v698_v38 = vpack.c.bf16 %v373_v37, %v372_v36  ;;  %v460_v50 = vunpack.c.0.s8 %v459_v48  ;;  %v631_v52 = vld [vmem:[%s899_s3] ss:$0 sm:$0xff]  ;;  %v482_v58 = vsub.s32 0, %v462_v51  ;;  %s767_s3 = scalar_lea.vmem %s613_s17, 256  ;;  %p772_p3 = scmp.lt.s32.totalorder %s613_s17, %s613_s17 }
  0x2c   :  { %655 = vmatmul.mubr.msk.f32.vlgmr.msra.gmra.mrb[0].mxu0 %vm49_vm1, %v48_v3  ;;  %660 = vmatmul.mubr.msk.f32.vlgmr.msra.gmra.mrb[0].mxu1 %vm49_vm1, %v48_v3  ;;  %p768_p2 = scmp.ne.s32.totalorder %s613_s17, %s767_s3  ;;  %p773_p4 = scmp.lt.s32.totalorder %s767_s3, %s767_s3 }
  0x2d   :  { %663 = vmatpush3.msra.mxu0 %v46_v1  ;;  %664 = vmatprep.mubr.msk.f32.mxu0 %vm800_vm0, %v799_v0  ;;  %v463_v53 = vsub.s32 %v460_v50, %v462_v51 }
  0x2e   :  { %668 = vmatpush3.msra.mxu1 %v47_v2  ;;  %669 = vmatprep.mubr.msk.f32.mxu1 %vm800_vm0, %v799_v0  ;;  %p774_p5 = por %p773_p4, %p772_p3 }
  0x2f   :  { %700 = vmatprep.subr.bf16.mxu1 %v801_v20  ;;  %694 = vmatprep.subr.bf16.mxu0 %v801_v20 }
  0x30   :  { %p775_p6 = pnand %p774_p5, %p768_p2 }
  0xff   :  { %v122_v4 = vpop.f32.mrb[0].mxu0  ;;  %v195_v5 = vpop.f32.mrb[0].mxu1 }
 0x100   :  { %v656_v6 = vpop.f32.mrb[1].mxu0  ;;  %v200_v7 = vsel %vm199_vm2, %v122_v4, -inf  ;;  %v661_v8 = vpop.f32.mrb[1].mxu1  ;;  %v203_v9 = vsel %vm199_vm2, %v195_v5, -inf }
 0x101   :  { %201 = vmax.xlane.f32.xlu0 %v200_v7 }
 0x105   :  { %204 = vmax.xlane.f32.xlu0 %v203_v9 }
 0x18e   :  { %v202_v10 = vpop.xlane.xlu0 %201 }
 0x18f   :  { %v206_v11 = vsub.f32 %v122_v4, %v202_v10 }
 0x191   :  { %v208_v12 = vmul.f32 1.442695, %v206_v11 }
 0x192   :  { %v205_v13 = vpop.xlane.xlu0 %204 }
 0x193   :  { %715 = vpow2.f32 %v208_v12  ;;  %v207_v14 = vsub.f32 %v195_v5, %v205_v13 }
 0x195   :  { %v210_v15 = vmul.f32 1.442695, %v207_v14 }
 0x197   :  { %717 = vpow2.f32 %v210_v15 }
 0x19d   :  { %v716_v16 = vpop.eup %715 }
 0x19e   :  { %v212_v17 = vsel %vm199_vm2, %v716_v16, 0.0 }
 0x19f   :  { %213 = vadd.xlane.f32.xlu1 %v212_v17 }
 0x1a1   :  { %v718_v18 = vpop.eup %717 }
 0x1a2   :  { %v215_v19 = vsel %vm199_vm2, %v718_v18, 0.0 }
 0x1a3   :  { %216 = vadd.xlane.f32.xlu1 %v215_v19 }
 0x22c   :  { %v214_v21 = vpop.xlane.xlu1 %213 }
 0x22d   :  { %719 = vrcp.f32 %v214_v21 }
 0x230   :  { %v217_v22 = vpop.xlane.xlu1 %216 }
 0x231   :  { %721 = vrcp.f32 %v217_v22 }
 0x237   :  { %v720_v23 = vpop.eup %719 }
 0x238   :  { %v220_v24 = vmul.f32 %v720_v23, %v716_v16 }
 0x23a   :  { %665 = vmatmul.mubr.msk.f32.vlgmr.msra.gmra.mrb[2].mxu0 %vm222_vm3, %v220_v24 }
 0x23b   :  { %v722_v27 = vpop.eup %721  ;;  %680 = vmatprep.mubr.msk.f32.mxu0 %vm800_vm0, %v799_v0  ;;  %696 = vmatpush3.bf16.msra.mxu0 %v695_v32 }
 0x23c   :  { %v221_v29 = vmul.f32 %v722_v27, %v718_v18  ;;  %697 = vmatprep.subr.bf16.mxu0 %v801_v20 }
 0x23e   :  { %670 = vmatmul.mubr.msk.f32.vlgmr.msra.gmra.mrb[2].mxu1 %vm222_vm3, %v221_v29 }
 0x23f   :  { %702 = vmatpush3.bf16.msra.mxu1 %v701_v28  ;;  %691 = vmatprep.mubr.msk.f32.mxu1 %vm800_vm0, %v799_v0 }
 0x240   :  { %703 = vmatprep.subr.bf16.mxu1 %v801_v20  ;;  %699 = vmatpush3.bf16.msra.mxu0 %v698_v38 }
 0x243   :  { %705 = vmatpush3.bf16.msra.mxu1 %v704_v35 }
 0x30d   :  { %v292_v39 = vpop.f32.mrb[2].mxu0 }
 0x30e   :  { %v666_v40 = vpop.f32.mrb[3].mxu0  ;;  %v498_v41 = vrot.slane %v292_v39, 1 }
 0x311   :  { %v365_v42 = vpop.f32.mrb[2].mxu1 }
 0x312   :  { %v382_v43 = vrot.slane %v365_v42, 7  ;;  %v499_v44 = vsel %vm383_vm4, %v365_v42, %v498_v41  ;;  %v671_v45 = vpop.f32.mrb[3].mxu1 }
 0x313   :  { %692 = vmatmul.mubr.msk.f32.vlgmr.msra.gmra.mrb[4].mxu1 %vm49_vm1, %v499_v44 }
 0x314   :  { %v384_v46 = vsel %vm383_vm4, %v382_v43, %v292_v39 }
 0x315   :  { %681 = vmatmul.mubr.msk.f32.vlgmr.msra.gmra.mrb[4].mxu0 %vm49_vm1, %v384_v46 }
 0x3e6   :  { %v568_v54 = vpop.f32.mrb[4].mxu1 }
 0x3e7   :  { %v569_v55 = vadd.f32 %v631_v52, %v568_v54  ;;  %v693_v56 = vpop.f32.mrb[5].mxu1 }
 0x3e8   :  { %v453_v57 = vpop.f32.mrb[4].mxu0 }
 0x3e9   :  { %v579_v59 = vrot.slane %v569_v55, %v463_v53  ;;  %v454_v60 = vadd.f32 %v631_v52, %v453_v57  ;;  %v682_v61 = vpop.f32.mrb[5].mxu0 }
 0x3eb   :  { %v580_v62 = vcombine.high %v579_v59, %v579_v59  ;;  %v587_v63 = vrot.slane %v579_v59, %v463_v53  ;;  %v464_v0 = vrot.slane %v454_v60, %v463_v53 }
 0x3ed   :  { %v594_v1 = vrot.slane %v580_v62, %v463_v53  ;;  %v598_v2 = vrot.slane %v587_v63, %v482_v58  ;;  %v465_v3 = vcombine.high %v464_v0, %v464_v0  ;;  %v472_v4 = vrot.slane %v464_v0, %v463_v53 }
 0x3ef   :  { %v602_v5 = vrot.slane %v594_v1, %v482_v58  ;;  %v479_v6 = vrot.slane %v465_v3, %v463_v53  ;;  %v483_v7 = vrot.slane %v472_v4, %v482_v58  ;;  %605 = vst.msk [vmem:[#allocation7 + $0x4] sm:$0xf] %vm490_vm5, %v598_v2 }
 0x3f1   :  { %v487_v8 = vrot.slane %v479_v6, %v482_v58  ;;  %491 = vst.msk [vmem:[#allocation7] sm:$0xf] %vm490_vm5, %v483_v7  ;;  %606 = vst.msk [vmem:[#allocation7 + $0xc] sm:$0xf] %vm490_vm5, %v602_v5 }
 0x3f3   :  { %492 = vst.msk [vmem:[#allocation7 + $0x8] sm:$0xf] %vm490_vm5, %v487_v8 }
 0x3f4   :  { %778 = shalt.err (!%p775_p6)
}
 0x3f5   :  { %s779_s20 = scalar_lea.hbm %s900_s4, 256 }
 0x3f6   :  { %p780_p7 = scmp.ne.s32.totalorder %s900_s4, %s779_s20  ;;  %p783_p8 = scmp.lt.u32.totalorder %s779_s20, %s900_s4 }
 0x3f8   :  { %p785_p9 = pnand %p783_p8, %p780_p7 }
 0x3fa   :  { %788 = shalt.err (!%p785_p9)
}
 0x3fb   :  { %618 = dma.vmem_to_hbm [thread:$0]  %s613_s17, 256, %s900_s4, [#allocation4], %s796_s25, %s796_s25, %s797_s26  }
 0x3fc   :  { %793 = dma.done.wait [#allocation4], 256  }
 0x3fd   :  { %794 = vsyncadd [#allocation4], 4294967040 }
 0x3fe   :  { %622 = vsyncpa [#allocation3], 1 }
 0x3ff   :  { %623 = vsyncpa [#allocation6], 1 }
 0x400   :  { %624 = vsyncpa [#allocation4], 1 }

</bundles_post_ra>
